<compile_context>
chip_gen: v5e
topology: v5e:2x2
jax: 0.10.0
libtpu: 0.0.40
codegen_flags: <defaults>
</compile_context>

<pallas_src>
import functools

import jax
import jax.numpy as jnp
import numpy as np
from jax.experimental import pallas as pl
from jax.experimental.pallas import tpu as pltpu


# --------------------------------------------------------------------------- #
# Kernel
# --------------------------------------------------------------------------- #
def growth_kernel(x_ref, win_ref, a_ref, wout_ref, c2_ref, o_ref,
                  rhs_ref, s2_ref, *, nhead, d_head, seq_len, block_b):
    """One batch block (block_b samples) per grid step.

    x_ref   : (bb*T, D)        compute dtype, rows batch-major (b, t)
    win_ref : (D, D)           compute dtype
    a_ref   : (H, T, T)        compute dtype   folded smoothing matrices
    wout_ref: (D, D)           compute dtype
    c2_ref  : (T, D)           f32             folded additive constants
    o_ref   : (bb*T, D)        output dtype    dense, lane-aligned block
    rhs_ref : (H, T, bb*dh)    compute dtype   head-major smoothing RHS scratch
    s2_ref  : (bb*T, D)        compute dtype   in_proj / smoothed-values scratch
    """
    t = seq_len
    dh = d_head
    bb = block_b

    # (1) in_proj: ONE (bb*T, D) @ (D, D) matmul (b_in folded into C2 host-side).
    #     Staged through the s2 scratch (dense, full-lane store) instead of a
    #     long-lived f32 value.
    s2_ref[...] = jnp.dot(x_ref[...], win_ref[...],
                          preferred_element_type=jnp.float32).astype(s2_ref.dtype)

    # (2a) Regroup rows=(b, t), cols=(h, f)  ->  head-major, batch-wide RHS
    #      rhs[h] : (T, bb*dh) with cols=(b, f).  Pure data movement; the H*bb
    #      small static-sliced copies are T x cheaper than the matmuls below.
    for h in range(nhead):
        lo = h * dh
        for bl in range(bb):
            rhs_ref[h, :, bl * dh:(bl + 1) * dh] = \
                s2_ref[bl * t:(bl + 1) * t, lo:lo + dh]

    # (2b) Exponential smoothing: ONE (T, T) @ (T, bb*dh) matmul per head
    #      (N = bb*dh lanes -> full MXU fill), result regrouped back into
    #      batch-major rows for the out_proj.
    # TODO(synk): skip strictly-upper-triangle K-tiles of A[h] (exact, ~2x).
    for h in range(nhead):
        lo = h * dh
        es = jnp.dot(a_ref[h], rhs_ref[h],
                     preferred_element_type=jnp.float32).astype(s2_ref.dtype)
        for bl in range(bb):
            s2_ref[bl * t:(bl + 1) * t, lo:lo + dh] = \
                es[:, bl * dh:(bl + 1) * dh]

    # (3) out_proj: ONE (bb*T, D) @ (D, D) matmul, then a SINGLE broadcast add
    #     of the folded constants, and one dense lane-aligned store.
    o = jnp.dot(s2_ref[...], wout_ref[...], preferred_element_type=jnp.float32)
    c2 = c2_ref[...]
    if bb == 1:
        o = o + c2
    else:
        d = o.shape[-1]
        # T is padded to a multiple of 8 in the wrapper, so this reshape is a
        # layout no-op (no relayout / masked stores).
        o = (o.reshape(bb, t, d) + c2[None]).reshape(bb * t, d)
    o_ref[...] = o.astype(o_ref.dtype)


# --------------------------------------------------------------------------- #
# Generation-aware sizing helpers
# --------------------------------------------------------------------------- #
def _device_kind():
    try:
        return jax.devices()[0].device_kind.lower()
    except Exception:
        return ""


def _vmem_policy(kind):
    """Returns (vmem cap for vmem_limit_bytes, prefer an even grid?)."""
    if "v7" in kind or "7x" in kind:
        return 56 * 2 ** 20, True          # v7x: 64 MiB physical, 2 TCs/chip
    if "v4" in kind or "v5p" in kind:
        return 100 * 2 ** 20, True         # megacore, 128 MiB physical
    if "v5" in kind or "v6" in kind:
        return 100 * 2 ** 20, False        # v5e / v6e: single TC, 128 MiB
    return 56 * 2 ** 20, True              # unknown: conservative


def _vmem_estimate(bb, t, d, h, csz, osz, const_bufs):
    """Bytes of VMEM, including lane padding, scratch and the implicit f32
    intermediates (the out_proj accumulator / per-head smoothing result)."""
    lane = 128
    rows = bb * t
    dh = d // h
    d_cols = max(d, lane)
    a_cols = max(t, lane)
    rhs_cols = max(bb * dh, lane)
    est = 0
    est += 2 * rows * d_cols * csz               # x block (double buffered)
    est += 2 * rows * d_cols * osz               # out block (double buffered)
    est += const_bufs * 2 * d * d_cols * csz     # W_in + W_out
    est += const_bufs * h * t * a_cols * csz     # A (folded smoothing)
    est += const_bufs * t * d_cols * 4           # C2 (f32)
    est += h * t * rhs_cols * csz                # rhs scratch
    est += rows * d_cols * csz                   # s2 scratch
    est += 2 * rows * d_cols * 4                 # implicit f32 intermediates
    est += t * rhs_cols * 4                      # live per-head f32 result
    return est


def _pick_batch_block(b, t, d, h, csz, osz, budget, prefer_even, max_bb=16):
    """Largest divisor of B (<= max_bb to bound unrolled copy statements) whose
    VMEM estimate fits the budget.  Prefers an even grid on dual-core parts.
    Safe fallback is bb = 1 (never the whole batch)."""
    divisors = [c for c in range(1, min(b, max_bb) + 1) if b % c == 0]
    fitting = [c for c in divisors
               if _vmem_estimate(c, t, d, h, csz, osz, 1) <= budget]
    if not fitting:
        return 1
    if prefer_even:
        even = [c for c in fitting if (b // c) % 2 == 0]
        if even:
            return max(even)
    return max(fitting)


# --------------------------------------------------------------------------- #
# Wrapper
# --------------------------------------------------------------------------- #
def growth_layer_forward(x, params, *, nhead, d_head,
                         compute_dtype=jnp.bfloat16):
    b, t, d_model = x.shape
    W_in, b_in, W_out, b_out, z0, v0, sm_w = params
    assert nhead * d_head == d_model

    f32 = jnp.float32
    hp = jax.lax.Precision.HIGHEST

    # ---- parameter-only host precompute (glue, O(H*T^2 + T*D + D^2)) --------
    w = jax.nn.sigmoid(sm_w.astype(f32))                           # (H, 1)
    powers = jnp.arange(t, dtype=f32)
    delta = powers[None, :, None] - powers[None, None, :]          # (1, T, T)
    w3 = w[:, :, None]
    K = jnp.where(delta >= 0.0,
                  (1.0 - w3) * w3 ** jnp.maximum(delta, 0.0), 0.0)  # (H, T, T)
    # Fold the first difference dv_j = v_j - v_{j-1} into the smoothing matrix.
    A = K - jnp.pad(K[:, :, 1:], ((0, 0), (0, 0), (0, 1)))         # (H, T, T)
    k0 = K[:, :, 0]                                                # z0 coeff
    iw = w * (w ** powers[None, :])                                # w^{i+1}
    rows_a = jnp.sum(A, axis=-1)

    b_in_h = b_in.reshape(nhead, d_head).astype(f32)
    z0_f = z0.astype(f32)
    v0_2d = v0.reshape(nhead, d_head).astype(f32)

    # Additive constants of the smoothed sequence, per head: (H, T, Dh)
    C = (rows_a[:, :, None] * b_in_h[:, None, :]
         - k0[:, :, None] * z0_f[:, None, :]
         + iw[:, :, None] * v0_2d[:, None, :])
    C = jnp.transpose(C, (1, 0, 2)).reshape(t, d_model)            # (T, D)

    W_out_f = W_out.astype(f32)
    b_out_f = b_out.astype(f32)[None, :]
    C2 = jnp.dot(C, W_out_f, precision=hp) + b_out_f               # (T, D) f32
    row0 = jnp.dot(v0_2d.reshape(1, d_model), W_out_f, precision=hp) + b_out_f

    # ---- pad T to a multiple of 8: keeps every block / in-kernel reshape
    #      layout-aligned for arbitrary sequence lengths ----------------------
    t_pad = -(-t // 8) * 8
    pad = t_pad - t
    x_p = x if pad == 0 else jnp.pad(x, ((0, 0), (0, pad), (0, 0)))
    A_p = A if pad == 0 else jnp.pad(A, ((0, 0), (0, pad), (0, pad)))
    C2_p = C2 if pad == 0 else jnp.pad(C2, ((0, pad), (0, 0)))

    # ---- generation-aware batch block + VMEM budget --------------------------
    kind = _device_kind()
    vmem_cap, prefer_even = _vmem_policy(kind)
    csz = jnp.dtype(compute_dtype).itemsize
    osz = jnp.dtype(x.dtype).itemsize
    budget = int(vmem_cap * 0.6)
    bb = _pick_batch_block(b, t_pad, d_model, nhead, csz, osz, budget,
                           prefer_even)
    n_blocks = b // bb
    # Conservative limit: covers the default (double-buffered constants) path.
    est2 = _vmem_estimate(bb, t_pad, d_model, nhead, csz, osz, const_bufs=2)
    vmem_limit = int(min(vmem_cap, max(32 * 2 ** 20, int(est2 * 1.25))))

    # ---- operand layout / dtype plumbing -------------------------------------
    x_flat = x_p.reshape(b * t_pad, d_model).astype(compute_dtype)
    W_in_c = W_in.astype(compute_dtype)
    W_out_c = W_out.astype(compute_dtype)
    A_c = A_p.astype(compute_dtype)
    C2_f = C2_p.astype(f32)

    kernel = functools.partial(growth_kernel, nhead=nhead, d_head=d_head,
                               seq_len=t_pad, block_b=bb)

    def _call(single_buffer_consts):
        def const_spec(shape):
            idx = lambda i, _n=len(shape): (0,) * _n        # grid-invariant
            if single_buffer_consts:
                return pl.BlockSpec(shape, idx, pipeline_mode=pl.Buffered(1))
            return pl.BlockSpec(shape, idx)

        return pl.pallas_call(
            kernel,
            out_shape=jax.ShapeDtypeStruct((b * t_pad, d_model), x.dtype),
            grid=(n_blocks,),
            in_specs=[
                pl.BlockSpec((bb * t_pad, d_model), lambda i: (i, 0)),  # x
                const_spec((d_model, d_model)),                         # W_in
                const_spec((nhead, t_pad, t_pad)),                      # A
                const_spec((d_model, d_model)),                         # W_out
                const_spec((t_pad, d_model)),                           # C2
            ],
            out_specs=pl.BlockSpec((bb * t_pad, d_model), lambda i: (i, 0)),
            scratch_shapes=[
                pltpu.VMEM((nhead, t_pad, bb * d_head), compute_dtype),  # rhs
                pltpu.VMEM((bb * t_pad, d_model), compute_dtype),        # s2
            ],
            compiler_params=pltpu.CompilerParams(
                dimension_semantics=("parallel",),
                vmem_limit_bytes=vmem_limit),
        )(x_flat, W_in_c, A_c, W_out_c, C2_f)

    # Single-buffered grid-invariant constants when supported; genuine errors
    # are never masked (they fail both paths and the original is re-raised).
    if not hasattr(pl, "Buffered"):
        body2d = _call(False)
    else:
        try:
            body2d = _call(True)
        except (TypeError, AttributeError):
            # pipeline_mode kwarg / Buffered not supported by this JAX version.
            body2d = _call(False)
        except Exception as err:
            try:
                body2d = _call(False)
            except Exception:
                raise err

    # Dense kernel output -> (B, T, D); constant first row prepended here so
    # the kernel's stores stay lane/sublane aligned.
    body = body2d.reshape(b, t_pad, d_model)[:, :t, :]
    row0_b = jnp.broadcast_to(row0.astype(x.dtype)[None], (b, 1, d_model))
    return jnp.concatenate([row0_b, body], axis=1)


# --------------------------------------------------------------------------- #
# Pure-JAX reference (EMA recurrence == conv1d_fft path)
# --------------------------------------------------------------------------- #
def reference_forward(x, params, *, nhead, d_head):
    b, t, d_model = x.shape
    W_in, b_in, W_out, b_out, z0, v0, sm_w = params
    hp = jax.lax.Precision.HIGHEST

    v = jnp.dot(x, W_in, precision=hp) + b_in                      # (B, T, D)
    v = v.reshape(b, t, nhead, d_head)
    z0b = jnp.broadcast_to(z0[None, None], (b, 1, nhead, d_head))
    vals = jnp.concatenate([z0b, v], axis=1)
    dv = vals[:, 1:] - vals[:, :-1]                                # (B, T, H, Dh)

    w = jax.nn.sigmoid(sm_w)[:, 0]                                 # (H,)

    def step(s, x_t):
        s_new = w[None, :, None] * s + (1.0 - w[None, :, None]) * x_t
        return s_new, s_new

    s0 = jnp.broadcast_to(v0[0, 0], (b, nhead, d_head))
    _, ss = jax.lax.scan(step, s0, jnp.moveaxis(dv, 1, 0))
    es = jnp.moveaxis(ss, 0, 1)                                    # (B, T, H, Dh)

    out = jnp.concatenate(
        [jnp.broadcast_to(v0, (b, 1, nhead, d_head)), es], axis=1) # (B, T+1, H, Dh)
    out = out.reshape(b, t + 1, d_model)
    return jnp.dot(out, W_out, precision=hp) + b_out


if __name__ == "__main__":
    # Small shapes consistent with GrowthLayer: d_model = nhead * d_head.
    B, T, D_MODEL, NHEAD = 2, 8, 32, 4
    D_HEAD = D_MODEL // NHEAD

    key = jax.random.PRNGKey(0)
    ks = jax.random.split(key, 8)

    # Deterministic synthetic parameters (shapes from GrowthLayer.__init__).
    W_in = jax.random.normal(ks[0], (D_MODEL, D_MODEL), jnp.float32) / np.sqrt(D_MODEL)
    b_in = jax.random.normal(ks[1], (D_MODEL,), jnp.float32) * 0.1
    W_out = jax.random.normal(ks[2], (D_MODEL, D_MODEL), jnp.float32) / np.sqrt(D_MODEL)
    b_out = jax.random.normal(ks[3], (D_MODEL,), jnp.float32) * 0.1
    z0 = jax.random.normal(ks[4], (NHEAD, D_HEAD), jnp.float32)
    v0 = jax.random.normal(ks[5], (1, 1, NHEAD, D_HEAD), jnp.float32)
    sm_w = jax.random.normal(ks[6], (NHEAD, 1), jnp.float32)        # _smoothing_weight

    params = (W_in, b_in, W_out, b_out, z0, v0, sm_w)
    x = jax.random.normal(ks[7], (B, T, D_MODEL), jnp.float32)

    ref = jax.block_until_ready(
        reference_forward(x, params, nhead=NHEAD, d_head=D_HEAD))

    # f32 compute path: tight structural check against the reference.
    out_f32 = jax.block_until_ready(
        growth_layer_forward(x, params, nhead=NHEAD, d_head=D_HEAD,
                             compute_dtype=jnp.float32))
    assert out_f32.shape == (B, T + 1, D_MODEL), out_f32.shape
    np.testing.assert_allclose(np.asarray(out_f32), np.asarray(ref),
                               rtol=2e-3, atol=2e-3)

    # bf16 compute path (default on v5e/v6e/v7x): bf16 MXU operands with f32
    # accumulation and f32 constant folding — checked with a bf16 tolerance.
    out_bf16 = jax.block_until_ready(
        growth_layer_forward(x, params, nhead=NHEAD, d_head=D_HEAD))
    assert out_bf16.shape == (B, T + 1, D_MODEL), out_bf16.shape
    np.testing.assert_allclose(np.asarray(out_bf16), np.asarray(ref),
                               rtol=5e-2, atol=1e-1)

    print("KERNEL_OK")
</pallas_src>

<mosaic_0001>
module attributes {stable_mosaic.version = 11 : i64} {
  func.func @growth_kernel(%arg0: i32, %arg1: memref<8x32xf32, #tpu.memory_space<vmem>>, %arg2: memref<32x32xf32, #tpu.memory_space<vmem>>, %arg3: memref<4x8x8xf32, #tpu.memory_space<vmem>>, %arg4: memref<32x32xf32, #tpu.memory_space<vmem>>, %arg5: memref<8x32xf32, #tpu.memory_space<vmem>>, %arg6: memref<8x32xf32, #tpu.memory_space<vmem>>, %arg7: memref<4x8x8xf32, #tpu.memory_space<vmem>>, %arg8: memref<8x32xf32, #tpu.memory_space<vmem>>) attributes {dimension_semantics = [#tpu.dimension_semantics<parallel>], iteration_bounds = array<i64: 2>, scalar_prefetch = 0 : i64, scratch_operands = 2 : i64, tpu.core_type = #tpu.core_type<tc>, window_params = [{transform_indices = @transform_0, window_bounds = array<i64: 8, 32>}, {pipeline_mode = #tpu.pipeline_mode<synchronous>, transform_indices = @transform_1, window_bounds = array<i64: 32, 32>}, {pipeline_mode = #tpu.pipeline_mode<synchronous>, transform_indices = @transform_2, window_bounds = array<i64: 4, 8, 8>}, {pipeline_mode = #tpu.pipeline_mode<synchronous>, transform_indices = @transform_3, window_bounds = array<i64: 32, 32>}, {pipeline_mode = #tpu.pipeline_mode<synchronous>, transform_indices = @transform_4, window_bounds = array<i64: 8, 32>}, {transform_indices = @transform_5, window_bounds = array<i64: 8, 32>}]} {
    %c0 = arith.constant 0 : index
    %c0_0 = arith.constant 0 : index
    %0 = vector.load %arg1[%c0, %c0_0] : memref<8x32xf32, #tpu.memory_space<vmem>>, vector<8x32xf32>
    %c0_1 = arith.constant 0 : index
    %c0_2 = arith.constant 0 : index
    %1 = vector.load %arg2[%c0_1, %c0_2] : memref<32x32xf32, #tpu.memory_space<vmem>>, vector<32x32xf32>
    %cst = arith.constant dense<0.000000e+00> : vector<8x32xf32>
    %2 = tpu.matmul %0, %1, %cst {dimension_numbers = #tpu.dot_dimension_numbers<[1], [0], [0], [1], [0, 0, 1, 1], [], []>} : vector<8x32xf32>, vector<32x32xf32>, vector<8x32xf32> -> vector<8x32xf32>
    %c0_3 = arith.constant 0 : index
    %c0_4 = arith.constant 0 : index
    %3 = vector.load %arg8[%c0_3, %c0_4] : memref<8x32xf32, #tpu.memory_space<vmem>>, vector<8x32xf32>
    tpu.vector_store %arg8[%c0_3, %c0_4], %2 {strides = array<i32>} : memref<8x32xf32, #tpu.memory_space<vmem>>, vector<8x32xf32>,
    %c0_5 = arith.constant 0 : index
    %c0_6 = arith.constant 0 : index
    %4 = vector.load %arg8[%c0_5, %c0_6] : memref<8x32xf32, #tpu.memory_space<vmem>>, vector<8x8xf32>
    %c0_7 = arith.constant 0 : index
    %c0_8 = arith.constant 0 : index
    %c0_9 = arith.constant 0 : index
    %5 = vector.load %arg7[%c0_7, %c0_8, %c0_9] : memref<4x8x8xf32, #tpu.memory_space<vmem>>, vector<1x8x8xf32>
    %6 = vector.shape_cast %5 : vector<1x8x8xf32> to vector<8x8xf32>
    %7 = vector.shape_cast %4 : vector<8x8xf32> to vector<1x8x8xf32>
    tpu.vector_store %arg7[%c0_7, %c0_8, %c0_9], %7 {strides = array<i32>} : memref<4x8x8xf32, #tpu.memory_space<vmem>>, vector<1x8x8xf32>,
    %c0_10 = arith.constant 0 : index
    %c8 = arith.constant 8 : index
    %8 = vector.load %arg8[%c0_10, %c8] : memref<8x32xf32, #tpu.memory_space<vmem>>, vector<8x8xf32>
    %c1 = arith.constant 1 : index
    %c0_11 = arith.constant 0 : index
    %c0_12 = arith.constant 0 : index
    %9 = vector.load %arg7[%c1, %c0_11, %c0_12] : memref<4x8x8xf32, #tpu.memory_space<vmem>>, vector<1x8x8xf32>
    %10 = vector.shape_cast %9 : vector<1x8x8xf32> to vector<8x8xf32>
    %11 = vector.shape_cast %8 : vector<8x8xf32> to vector<1x8x8xf32>
    tpu.vector_store %arg7[%c1, %c0_11, %c0_12], %11 {strides = array<i32>} : memref<4x8x8xf32, #tpu.memory_space<vmem>>, vector<1x8x8xf32>,
    %c0_13 = arith.constant 0 : index
    %c16 = arith.constant 16 : index
    %12 = vector.load %arg8[%c0_13, %c16] : memref<8x32xf32, #tpu.memory_space<vmem>>, vector<8x8xf32>
    %c2 = arith.constant 2 : index
    %c0_14 = arith.constant 0 : index
    %c0_15 = arith.constant 0 : index
    %13 = vector.load %arg7[%c2, %c0_14, %c0_15] : memref<4x8x8xf32, #tpu.memory_space<vmem>>, vector<1x8x8xf32>
    %14 = vector.shape_cast %13 : vector<1x8x8xf32> to vector<8x8xf32>
    %15 = vector.shape_cast %12 : vector<8x8xf32> to vector<1x8x8xf32>
    tpu.vector_store %arg7[%c2, %c0_14, %c0_15], %15 {strides = array<i32>} : memref<4x8x8xf32, #tpu.memory_space<vmem>>, vector<1x8x8xf32>,
    %c0_16 = arith.constant 0 : index
    %c24 = arith.constant 24 : index
    %16 = vector.load %arg8[%c0_16, %c24] : memref<8x32xf32, #tpu.memory_space<vmem>>, vector<8x8xf32>
    %c3 = arith.constant 3 : index
    %c0_17 = arith.constant 0 : index
    %c0_18 = arith.constant 0 : index
    %17 = vector.load %arg7[%c3, %c0_17, %c0_18] : memref<4x8x8xf32, #tpu.memory_space<vmem>>, vector<1x8x8xf32>
    %18 = vector.shape_cast %17 : vector<1x8x8xf32> to vector<8x8xf32>
    %19 = vector.shape_cast %16 : vector<8x8xf32> to vector<1x8x8xf32>
    tpu.vector_store %arg7[%c3, %c0_17, %c0_18], %19 {strides = array<i32>} : memref<4x8x8xf32, #tpu.memory_space<vmem>>, vector<1x8x8xf32>,
    %c0_19 = arith.constant 0 : index
    %c0_20 = arith.constant 0 : index
    %c0_21 = arith.constant 0 : index
    %20 = vector.load %arg3[%c0_19, %c0_20, %c0_21] : memref<4x8x8xf32, #tpu.memory_space<vmem>>, vector<1x8x8xf32>
    %21 = vector.shape_cast %20 : vector<1x8x8xf32> to vector<8x8xf32>
    %c0_22 = arith.constant 0 : index
    %c0_23 = arith.constant 0 : index
    %c0_24 = arith.constant 0 : index
    %22 = vector.load %arg7[%c0_22, %c0_23, %c0_24] : memref<4x8x8xf32, #tpu.memory_space<vmem>>, vector<1x8x8xf32>
    %23 = vector.shape_cast %22 : vector<1x8x8xf32> to vector<8x8xf32>
    %cst_25 = arith.constant dense<0.000000e+00> : vector<8x8xf32>
    %24 = tpu.matmul %21, %23, %cst_25 {dimension_numbers = #tpu.dot_dimension_numbers<[1], [0], [0], [1], [0, 0, 1, 1], [], []>} : vector<8x8xf32>, vector<8x8xf32>, vector<8x8xf32> -> vector<8x8xf32>
    %c0_26 = arith.constant 0 : index
    %c0_27 = arith.constant 0 : index
    %25 = vector.load %arg8[%c0_26, %c0_27] : memref<8x32xf32, #tpu.memory_space<vmem>>, vector<8x8xf32>
    tpu.vector_store %arg8[%c0_26, %c0_27], %24 {strides = array<i32>} : memref<8x32xf32, #tpu.memory_space<vmem>>, vector<8x8xf32>,
    %c1_28 = arith.constant 1 : index
    %c0_29 = arith.constant 0 : index
    %c0_30 = arith.constant 0 : index
    %26 = vector.load %arg3[%c1_28, %c0_29, %c0_30] : memref<4x8x8xf32, #tpu.memory_space<vmem>>, vector<1x8x8xf32>
    %27 = vector.shape_cast %26 : vector<1x8x8xf32> to vector<8x8xf32>
    %c1_31 = arith.constant 1 : index
    %c0_32 = arith.constant 0 : index
    %c0_33 = arith.constant 0 : index
    %28 = vector.load %arg7[%c1_31, %c0_32, %c0_33] : memref<4x8x8xf32, #tpu.memory_space<vmem>>, vector<1x8x8xf32>
    %29 = vector.shape_cast %28 : vector<1x8x8xf32> to vector<8x8xf32>
    %cst_34 = arith.constant dense<0.000000e+00> : vector<8x8xf32>
    %30 = tpu.matmul %27, %29, %cst_34 {dimension_numbers = #tpu.dot_dimension_numbers<[1], [0], [0], [1], [0, 0, 1, 1], [], []>} : vector<8x8xf32>, vector<8x8xf32>, vector<8x8xf32> -> vector<8x8xf32>
    %c0_35 = arith.constant 0 : index
    %c8_36 = arith.constant 8 : index
    %31 = vector.load %arg8[%c0_35, %c8_36] : memref<8x32xf32, #tpu.memory_space<vmem>>, vector<8x8xf32>
    tpu.vector_store %arg8[%c0_35, %c8_36], %30 {strides = array<i32>} : memref<8x32xf32, #tpu.memory_space<vmem>>, vector<8x8xf32>,
    %c2_37 = arith.constant 2 : index
    %c0_38 = arith.constant 0 : index
    %c0_39 = arith.constant 0 : index
    %32 = vector.load %arg3[%c2_37, %c0_38, %c0_39] : memref<4x8x8xf32, #tpu.memory_space<vmem>>, vector<1x8x8xf32>
    %33 = vector.shape_cast %32 : vector<1x8x8xf32> to vector<8x8xf32>
    %c2_40 = arith.constant 2 : index
    %c0_41 = arith.constant 0 : index
    %c0_42 = arith.constant 0 : index
    %34 = vector.load %arg7[%c2_40, %c0_41, %c0_42] : memref<4x8x8xf32, #tpu.memory_space<vmem>>, vector<1x8x8xf32>
    %35 = vector.shape_cast %34 : vector<1x8x8xf32> to vector<8x8xf32>
    %cst_43 = arith.constant dense<0.000000e+00> : vector<8x8xf32>
    %36 = tpu.matmul %33, %35, %cst_43 {dimension_numbers = #tpu.dot_dimension_numbers<[1], [0], [0], [1], [0, 0, 1, 1], [], []>} : vector<8x8xf32>, vector<8x8xf32>, vector<8x8xf32> -> vector<8x8xf32>
    %c0_44 = arith.constant 0 : index
    %c16_45 = arith.constant 16 : index
    %37 = vector.load %arg8[%c0_44, %c16_45] : memref<8x32xf32, #tpu.memory_space<vmem>>, vector<8x8xf32>
    tpu.vector_store %arg8[%c0_44, %c16_45], %36 {strides = array<i32>} : memref<8x32xf32, #tpu.memory_space<vmem>>, vector<8x8xf32>,
    %c3_46 = arith.constant 3 : index
    %c0_47 = arith.constant 0 : index
    %c0_48 = arith.constant 0 : index
    %38 = vector.load %arg3[%c3_46, %c0_47, %c0_48] : memref<4x8x8xf32, #tpu.memory_space<vmem>>, vector<1x8x8xf32>
    %39 = vector.shape_cast %38 : vector<1x8x8xf32> to vector<8x8xf32>
    %c3_49 = arith.constant 3 : index
    %c0_50 = arith.constant 0 : index
    %c0_51 = arith.constant 0 : index
    %40 = vector.load %arg7[%c3_49, %c0_50, %c0_51] : memref<4x8x8xf32, #tpu.memory_space<vmem>>, vector<1x8x8xf32>
    %41 = vector.shape_cast %40 : vector<1x8x8xf32> to vector<8x8xf32>
    %cst_52 = arith.constant dense<0.000000e+00> : vector<8x8xf32>
    %42 = tpu.matmul %39, %41, %cst_52 {dimension_numbers = #tpu.dot_dimension_numbers<[1], [0], [0], [1], [0, 0, 1, 1], [], []>} : vector<8x8xf32>, vector<8x8xf32>, vector<8x8xf32> -> vector<8x8xf32>
    %c0_53 = arith.constant 0 : index
    %c24_54 = arith.constant 24 : index
    %43 = vector.load %arg8[%c0_53, %c24_54] : memref<8x32xf32, #tpu.memory_space<vmem>>, vector<8x8xf32>
    tpu.vector_store %arg8[%c0_53, %c24_54], %42 {strides = array<i32>} : memref<8x32xf32, #tpu.memory_space<vmem>>, vector<8x8xf32>,
    %c0_55 = arith.constant 0 : index
    %c0_56 = arith.constant 0 : index
    %44 = vector.load %arg8[%c0_55, %c0_56] : memref<8x32xf32, #tpu.memory_space<vmem>>, vector<8x32xf32>
    %c0_57 = arith.constant 0 : index
    %c0_58 = arith.constant 0 : index
    %45 = vector.load %arg4[%c0_57, %c0_58] : memref<32x32xf32, #tpu.memory_space<vmem>>, vector<32x32xf32>
    %cst_59 = arith.constant dense<0.000000e+00> : vector<8x32xf32>
    %46 = tpu.matmul %44, %45, %cst_59 {dimension_numbers = #tpu.dot_dimension_numbers<[1], [0], [0], [1], [0, 0, 1, 1], [], []>} : vector<8x32xf32>, vector<32x32xf32>, vector<8x32xf32> -> vector<8x32xf32>
    %c0_60 = arith.constant 0 : index
    %c0_61 = arith.constant 0 : index
    %47 = vector.load %arg5[%c0_60, %c0_61] : memref<8x32xf32, #tpu.memory_space<vmem>>, vector<8x32xf32>
    %48 = arith.addf %46, %47 : vector<8x32xf32>
    %c0_62 = arith.constant 0 : index
    %c0_63 = arith.constant 0 : index
    %49 = vector.load %arg6[%c0_62, %c0_63] : memref<8x32xf32, #tpu.memory_space<vmem>>, vector<8x32xf32>
    tpu.vector_store %arg6[%c0_62, %c0_63], %48 {strides = array<i32>} : memref<8x32xf32, #tpu.memory_space<vmem>>, vector<8x32xf32>,
    return
  }
  func.func @transform_0(%arg0: i32) -> (i32, i32) {
    %c0_i32 = arith.constant 0 : i32
    %c0_i32_0 = arith.constant 0 : i32
    return %arg0, %c0_i32 : i32, i32
  }
  func.func @transform_1(%arg0: i32) -> (i32, i32) {
    %c0_i32 = arith.constant 0 : i32
    %c0_i32_0 = arith.constant 0 : i32
    %c0_i32_1 = arith.constant 0 : i32
    return %c0_i32, %c0_i32_0 : i32, i32
  }
  func.func @transform_2(%arg0: i32) -> (i32, i32, i32) {
    %c0_i32 = arith.constant 0 : i32
    %c0_i32_0 = arith.constant 0 : i32
    %c0_i32_1 = arith.constant 0 : i32
    %c0_i32_2 = arith.constant 0 : i32
    return %c0_i32, %c0_i32_0, %c0_i32_1 : i32, i32, i32
  }
  func.func @transform_3(%arg0: i32) -> (i32, i32) {
    %c0_i32 = arith.constant 0 : i32
    %c0_i32_0 = arith.constant 0 : i32
    %c0_i32_1 = arith.constant 0 : i32
    return %c0_i32, %c0_i32_0 : i32, i32
  }
  func.func @transform_4(%arg0: i32) -> (i32, i32) {
    %c0_i32 = arith.constant 0 : i32
    %c0_i32_0 = arith.constant 0 : i32
    %c0_i32_1 = arith.constant 0 : i32
    return %c0_i32, %c0_i32_0 : i32, i32
  }
  func.func @transform_5(%arg0: i32) -> (i32, i32) {
    %c0_i32 = arith.constant 0 : i32
    %c0_i32_0 = arith.constant 0 : i32
    return %arg0, %c0_i32 : i32, i32
  }
}

module attributes {stable_mosaic.version = 11 : i64} {
  func.func @growth_kernel(%arg0: i32, %arg1: memref<8x32xf32, #tpu.memory_space<vmem>>, %arg2: memref<32x32xf32, #tpu.memory_space<vmem>>, %arg3: memref<4x8x8xf32, #tpu.memory_space<vmem>>, %arg4: memref<32x32xf32, #tpu.memory_space<vmem>>, %arg5: memref<8x32xf32, #tpu.memory_space<vmem>>, %arg6: memref<8x32xf32, #tpu.memory_space<vmem>>, %arg7: memref<4x8x8xf32, #tpu.memory_space<vmem>>, %arg8: memref<8x32xf32, #tpu.memory_space<vmem>>) attributes {dimension_semantics = [#tpu.dimension_semantics<parallel>], iteration_bounds = array<i64: 2>, scalar_prefetch = 0 : i64, scratch_operands = 2 : i64, tpu.core_type = #tpu.core_type<tc>, window_params = [{transform_indices = @transform_0, window_bounds = array<i64: 8, 32>}, {pipeline_mode = #tpu.pipeline_mode<synchronous>, transform_indices = @transform_1, window_bounds = array<i64: 32, 32>}, {pipeline_mode = #tpu.pipeline_mode<synchronous>, transform_indices = @transform_2, window_bounds = array<i64: 4, 8, 8>}, {pipeline_mode = #tpu.pipeline_mode<synchronous>, transform_indices = @transform_3, window_bounds = array<i64: 32, 32>}, {pipeline_mode = #tpu.pipeline_mode<synchronous>, transform_indices = @transform_4, window_bounds = array<i64: 8, 32>}, {transform_indices = @transform_5, window_bounds = array<i64: 8, 32>}]} {
    %c0 = arith.constant 0 : index
    %c0_0 = arith.constant 0 : index
    %0 = vector.load %arg1[%c0, %c0_0] : memref<8x32xf32, #tpu.memory_space<vmem>>, vector<8x32xf32>
    %c0_1 = arith.constant 0 : index
    %c0_2 = arith.constant 0 : index
    %1 = vector.load %arg2[%c0_1, %c0_2] : memref<32x32xf32, #tpu.memory_space<vmem>>, vector<32x32xf32>
    %cst = arith.constant dense<0.000000e+00> : vector<8x32xf32>
    %2 = tpu.matmul %0, %1, %cst {dimension_numbers = #tpu.dot_dimension_numbers<[1], [0], [0], [1], [0, 0, 1, 1], [], []>} : vector<8x32xf32>, vector<32x32xf32>, vector<8x32xf32> -> vector<8x32xf32>
    %c0_3 = arith.constant 0 : index
    %c0_4 = arith.constant 0 : index
    %3 = vector.load %arg8[%c0_3, %c0_4] : memref<8x32xf32, #tpu.memory_space<vmem>>, vector<8x32xf32>
    tpu.vector_store %arg8[%c0_3, %c0_4], %2 {strides = array<i32>} : memref<8x32xf32, #tpu.memory_space<vmem>>, vector<8x32xf32>,
    %c0_5 = arith.constant 0 : index
    %c0_6 = arith.constant 0 : index
    %4 = vector.load %arg8[%c0_5, %c0_6] : memref<8x32xf32, #tpu.memory_space<vmem>>, vector<8x8xf32>
    %c0_7 = arith.constant 0 : index
    %c0_8 = arith.constant 0 : index
    %c0_9 = arith.constant 0 : index
    %5 = vector.load %arg7[%c0_7, %c0_8, %c0_9] : memref<4x8x8xf32, #tpu.memory_space<vmem>>, vector<1x8x8xf32>
    %6 = vector.shape_cast %5 : vector<1x8x8xf32> to vector<8x8xf32>
    %7 = vector.shape_cast %4 : vector<8x8xf32> to vector<1x8x8xf32>
    tpu.vector_store %arg7[%c0_7, %c0_8, %c0_9], %7 {strides = array<i32>} : memref<4x8x8xf32, #tpu.memory_space<vmem>>, vector<1x8x8xf32>,
    %c0_10 = arith.constant 0 : index
    %c8 = arith.constant 8 : index
    %8 = vector.load %arg8[%c0_10, %c8] : memref<8x32xf32, #tpu.memory_space<vmem>>, vector<8x8xf32>
    %c1 = arith.constant 1 : index
    %c0_11 = arith.constant 0 : index
    %c0_12 = arith.constant 0 : index
    %9 = vector.load %arg7[%c1, %c0_11, %c0_12] : memref<4x8x8xf32, #tpu.memory_space<vmem>>, vector<1x8x8xf32>
    %10 = vector.shape_cast %9 : vector<1x8x8xf32> to vector<8x8xf32>
    %11 = vector.shape_cast %8 : vector<8x8xf32> to vector<1x8x8xf32>
    tpu.vector_store %arg7[%c1, %c0_11, %c0_12], %11 {strides = array<i32>} : memref<4x8x8xf32, #tpu.memory_space<vmem>>, vector<1x8x8xf32>,
    %c0_13 = arith.constant 0 : index
    %c16 = arith.constant 16 : index
    %12 = vector.load %arg8[%c0_13, %c16] : memref<8x32xf32, #tpu.memory_space<vmem>>, vector<8x8xf32>
    %c2 = arith.constant 2 : index
    %c0_14 = arith.constant 0 : index
    %c0_15 = arith.constant 0 : index
    %13 = vector.load %arg7[%c2, %c0_14, %c0_15] : memref<4x8x8xf32, #tpu.memory_space<vmem>>, vector<1x8x8xf32>
    %14 = vector.shape_cast %13 : vector<1x8x8xf32> to vector<8x8xf32>
    %15 = vector.shape_cast %12 : vector<8x8xf32> to vector<1x8x8xf32>
    tpu.vector_store %arg7[%c2, %c0_14, %c0_15], %15 {strides = array<i32>} : memref<4x8x8xf32, #tpu.memory_space<vmem>>, vector<1x8x8xf32>,
    %c0_16 = arith.constant 0 : index
    %c24 = arith.constant 24 : index
    %16 = vector.load %arg8[%c0_16, %c24] : memref<8x32xf32, #tpu.memory_space<vmem>>, vector<8x8xf32>
    %c3 = arith.constant 3 : index
    %c0_17 = arith.constant 0 : index
    %c0_18 = arith.constant 0 : index
    %17 = vector.load %arg7[%c3, %c0_17, %c0_18] : memref<4x8x8xf32, #tpu.memory_space<vmem>>, vector<1x8x8xf32>
    %18 = vector.shape_cast %17 : vector<1x8x8xf32> to vector<8x8xf32>
    %19 = vector.shape_cast %16 : vector<8x8xf32> to vector<1x8x8xf32>
    tpu.vector_store %arg7[%c3, %c0_17, %c0_18], %19 {strides = array<i32>} : memref<4x8x8xf32, #tpu.memory_space<vmem>>, vector<1x8x8xf32>,
    %c0_19 = arith.constant 0 : index
    %c0_20 = arith.constant 0 : index
    %c0_21 = arith.constant 0 : index
    %20 = vector.load %arg3[%c0_19, %c0_20, %c0_21] : memref<4x8x8xf32, #tpu.memory_space<vmem>>, vector<1x8x8xf32>
    %21 = vector.shape_cast %20 : vector<1x8x8xf32> to vector<8x8xf32>
    %c0_22 = arith.constant 0 : index
    %c0_23 = arith.constant 0 : index
    %c0_24 = arith.constant 0 : index
    %22 = vector.load %arg7[%c0_22, %c0_23, %c0_24] : memref<4x8x8xf32, #tpu.memory_space<vmem>>, vector<1x8x8xf32>
    %23 = vector.shape_cast %22 : vector<1x8x8xf32> to vector<8x8xf32>
    %cst_25 = arith.constant dense<0.000000e+00> : vector<8x8xf32>
    %24 = tpu.matmul %21, %23, %cst_25 {dimension_numbers = #tpu.dot_dimension_numbers<[1], [0], [0], [1], [0, 0, 1, 1], [], []>} : vector<8x8xf32>, vector<8x8xf32>, vector<8x8xf32> -> vector<8x8xf32>
    %c0_26 = arith.constant 0 : index
    %c0_27 = arith.constant 0 : index
    %25 = vector.load %arg8[%c0_26, %c0_27] : memref<8x32xf32, #tpu.memory_space<vmem>>, vector<8x8xf32>
    tpu.vector_store %arg8[%c0_26, %c0_27], %24 {strides = array<i32>} : memref<8x32xf32, #tpu.memory_space<vmem>>, vector<8x8xf32>,
    %c1_28 = arith.constant 1 : index
    %c0_29 = arith.constant 0 : index
    %c0_30 = arith.constant 0 : index
    %26 = vector.load %arg3[%c1_28, %c0_29, %c0_30] : memref<4x8x8xf32, #tpu.memory_space<vmem>>, vector<1x8x8xf32>
    %27 = vector.shape_cast %26 : vector<1x8x8xf32> to vector<8x8xf32>
    %c1_31 = arith.constant 1 : index
    %c0_32 = arith.constant 0 : index
    %c0_33 = arith.constant 0 : index
    %28 = vector.load %arg7[%c1_31, %c0_32, %c0_33] : memref<4x8x8xf32, #tpu.memory_space<vmem>>, vector<1x8x8xf32>
    %29 = vector.shape_cast %28 : vector<1x8x8xf32> to vector<8x8xf32>
    %cst_34 = arith.constant dense<0.000000e+00> : vector<8x8xf32>
    %30 = tpu.matmul %27, %29, %cst_34 {dimension_numbers = #tpu.dot_dimension_numbers<[1], [0], [0], [1], [0, 0, 1, 1], [], []>} : vector<8x8xf32>, vector<8x8xf32>, vector<8x8xf32> -> vector<8x8xf32>
    %c0_35 = arith.constant 0 : index
    %c8_36 = arith.constant 8 : index
    %31 = vector.load %arg8[%c0_35, %c8_36] : memref<8x32xf32, #tpu.memory_space<vmem>>, vector<8x8xf32>
    tpu.vector_store %arg8[%c0_35, %c8_36], %30 {strides = array<i32>} : memref<8x32xf32, #tpu.memory_space<vmem>>, vector<8x8xf32>,
    %c2_37 = arith.constant 2 : index
    %c0_38 = arith.constant 0 : index
    %c0_39 = arith.constant 0 : index
    %32 = vector.load %arg3[%c2_37, %c0_38, %c0_39] : memref<4x8x8xf32, #tpu.memory_space<vmem>>, vector<1x8x8xf32>
    %33 = vector.shape_cast %32 : vector<1x8x8xf32> to vector<8x8xf32>
    %c2_40 = arith.constant 2 : index
    %c0_41 = arith.constant 0 : index
    %c0_42 = arith.constant 0 : index
    %34 = vector.load %arg7[%c2_40, %c0_41, %c0_42] : memref<4x8x8xf32, #tpu.memory_space<vmem>>, vector<1x8x8xf32>
    %35 = vector.shape_cast %34 : vector<1x8x8xf32> to vector<8x8xf32>
    %cst_43 = arith.constant dense<0.000000e+00> : vector<8x8xf32>
    %36 = tpu.matmul %33, %35, %cst_43 {dimension_numbers = #tpu.dot_dimension_numbers<[1], [0], [0], [1], [0, 0, 1, 1], [], []>} : vector<8x8xf32>, vector<8x8xf32>, vector<8x8xf32> -> vector<8x8xf32>
    %c0_44 = arith.constant 0 : index
    %c16_45 = arith.constant 16 : index
    %37 = vector.load %arg8[%c0_44, %c16_45] : memref<8x32xf32, #tpu.memory_space<vmem>>, vector<8x8xf32>
    tpu.vector_store %arg8[%c0_44, %c16_45], %36 {strides = array<i32>} : memref<8x32xf32, #tpu.memory_space<vmem>>, vector<8x8xf32>,
    %c3_46 = arith.constant 3 : index
    %c0_47 = arith.constant 0 : index
    %c0_48 = arith.constant 0 : index
    %38 = vector.load %arg3[%c3_46, %c0_47, %c0_48] : memref<4x8x8xf32, #tpu.memory_space<vmem>>, vector<1x8x8xf32>
    %39 = vector.shape_cast %38 : vector<1x8x8xf32> to vector<8x8xf32>
    %c3_49 = arith.constant 3 : index
    %c0_50 = arith.constant 0 : index
    %c0_51 = arith.constant 0 : index
    %40 = vector.load %arg7[%c3_49, %c0_50, %c0_51] : memref<4x8x8xf32, #tpu.memory_space<vmem>>, vector<1x8x8xf32>
    %41 = vector.shape_cast %40 : vector<1x8x8xf32> to vector<8x8xf32>
    %cst_52 = arith.constant dense<0.000000e+00> : vector<8x8xf32>
    %42 = tpu.matmul %39, %41, %cst_52 {dimension_numbers = #tpu.dot_dimension_numbers<[1], [0], [0], [1], [0, 0, 1, 1], [], []>} : vector<8x8xf32>, vector<8x8xf32>, vector<8x8xf32> -> vector<8x8xf32>
    %c0_53 = arith.constant 0 : index
    %c24_54 = arith.constant 24 : index
    %43 = vector.load %arg8[%c0_53, %c24_54] : memref<8x32xf32, #tpu.memory_space<vmem>>, vector<8x8xf32>
    tpu.vector_store %arg8[%c0_53, %c24_54], %42 {strides = array<i32>} : memref<8x32xf32, #tpu.memory_space<vmem>>, vector<8x8xf32>,
    %c0_55 = arith.constant 0 : index
    %c0_56 = arith.constant 0 : index
    %44 = vector.load %arg8[%c0_55, %c0_56] : memref<8x32xf32, #tpu.memory_space<vmem>>, vector<8x32xf32>
    %c0_57 = arith.constant 0 : index
    %c0_58 = arith.constant 0 : index
    %45 = vector.load %arg4[%c0_57, %c0_58] : memref<32x32xf32, #tpu.memory_space<vmem>>, vector<32x32xf32>
    %cst_59 = arith.constant dense<0.000000e+00> : vector<8x32xf32>
    %46 = tpu.matmul %44, %45, %cst_59 {dimension_numbers = #tpu.dot_dimension_numbers<[1], [0], [0], [1], [0, 0, 1, 1], [], []>} : vector<8x32xf32>, vector<32x32xf32>, vector<8x32xf32> -> vector<8x32xf32>
    %c0_60 = arith.constant 0 : index
    %c0_61 = arith.constant 0 : index
    %47 = vector.load %arg5[%c0_60, %c0_61] : memref<8x32xf32, #tpu.memory_space<vmem>>, vector<8x32xf32>
    %48 = arith.addf %46, %47 : vector<8x32xf32>
    %c0_62 = arith.constant 0 : index
    %c0_63 = arith.constant 0 : index
    %49 = vector.load %arg6[%c0_62, %c0_63] : memref<8x32xf32, #tpu.memory_space<vmem>>, vector<8x32xf32>
    tpu.vector_store %arg6[%c0_62, %c0_63], %48 {strides = array<i32>} : memref<8x32xf32, #tpu.memory_space<vmem>>, vector<8x32xf32>,
    return
  }
  func.func @transform_0(%arg0: i32) -> (i32, i32) {
    %c0_i32 = arith.constant 0 : i32
    %c0_i32_0 = arith.constant 0 : i32
    return %arg0, %c0_i32 : i32, i32
  }
  func.func @transform_1(%arg0: i32) -> (i32, i32) {
    %c0_i32 = arith.constant 0 : i32
    %c0_i32_0 = arith.constant 0 : i32
    %c0_i32_1 = arith.constant 0 : i32
    return %c0_i32, %c0_i32_0 : i32, i32
  }
  func.func @transform_2(%arg0: i32) -> (i32, i32, i32) {
    %c0_i32 = arith.constant 0 : i32
    %c0_i32_0 = arith.constant 0 : i32
    %c0_i32_1 = arith.constant 0 : i32
    %c0_i32_2 = arith.constant 0 : i32
    return %c0_i32, %c0_i32_0, %c0_i32_1 : i32, i32, i32
  }
  func.func @transform_3(%arg0: i32) -> (i32, i32) {
    %c0_i32 = arith.constant 0 : i32
    %c0_i32_0 = arith.constant 0 : i32
    %c0_i32_1 = arith.constant 0 : i32
    return %c0_i32, %c0_i32_0 : i32, i32
  }
  func.func @transform_4(%arg0: i32) -> (i32, i32) {
    %c0_i32 = arith.constant 0 : i32
    %c0_i32_0 = arith.constant 0 : i32
    %c0_i32_1 = arith.constant 0 : i32
    return %c0_i32, %c0_i32_0 : i32, i32
  }
  func.func @transform_5(%arg0: i32) -> (i32, i32) {
    %c0_i32 = arith.constant 0 : i32
    %c0_i32_0 = arith.constant 0 : i32
    return %arg0, %c0_i32 : i32, i32
  }
}

</mosaic_0001>

<bundles_post_ra>
// kernel: tpu_custom_call.1
= control target key start
LH: loop header
LB: loop body
LE: loop exit
PB: predicated region body
PF: predicated region fallthrough
CT: control target
= control target key end

     0   :  { %10 = vsyncpa [#allocation5], 0  ;;  %s1209_s0 = inlined_call_operand.hbm [shape: f32[16,32], index: 0, kind: input, shape index: {}]   ;;  %s1210_s1 = inlined_call_operand.hbm [shape: f32[32,32], index: 1, kind: input, shape index: {}]   ;;  %s1211_s2 = inlined_call_operand.hbm [shape: f32[4,8,8], index: 2, kind: input, shape index: {}]   ;;  %s1212_s3 = inlined_call_operand.hbm [shape: f32[32,32], index: 3, kind: input, shape index: {}]   ;;  %s1213_s4 = inlined_call_operand.hbm [shape: f32[8,32], index: 4, kind: input, shape index: {}]   ;;  %s1214_s5 = inlined_call_operand.hbm [shape: f32[16,32], index: 5, kind: output, shape index: {}]  }
   0x1   :  { %12 = vsyncpa [#allocation5 + $0x1], 0 }
   0x2   :  { %13 = vsyncpa [#allocation8], 0 }
   0x3   :  { %14 = vsyncpa [#allocation11], 0 }
   0x4   :  { %15 = vsyncpa [#allocation6], 0 }
   0x5   :  { %17 = vsyncpa [#allocation6 + $0x1], 0  ;;  %s1025_s18 = smov 0   ;;  %s1027_s19 = smov 0  }
   0x6   :  { %s1029_s20 = smov 0   ;;  %s1031_s21 = smov 0  }
   0x7 LB: > { %s175_s24 = sshll.u32 %s1210_s1, 4  ;;  %s1049_s25 = sadd.s32 4294967295, %s981_s21   ;;  %s981_s21 = sphi %s1031_s21, %s1226_s21   ;;  %s977_s20 = sphi %s1029_s20, %s1225_s20   ;;  %s973_s19 = sphi %s1027_s19, %s1224_s19   ;;  %s969_s18 = sphi %s1025_s18, %s1223_s18   ;;  %s176_s24 = int_to_ptr.hbm [resolvable:$true] %s175_s24 }
   0x8   : > { %p637_p0 = scmp.ge.s32.totalorder %s981_s21, 1  ;;  %p44_p1 = scmp.eq.s32.totalorder %s1049_s25, 0 }
   0x9   : > { %p164_p2 = scmp.lt.s32.totalorder %s981_s21, 3  ;;  %s983_s27 = smov [#allocation7]  }
   0xa   : > { %s177_s28 = sshll.u32 %s983_s27, 4  ;;  %s203_s6 = sshll.u32 %s1212_s3, 4  ;;  %s178_s28 = int_to_ptr.vmem [resolvable:$true] %s177_s28  ;;  %s204_s6 = int_to_ptr.hbm [resolvable:$true] %s203_s6 }
   0xb   : > { %p1054_p3 = pnand %p637_p0, %p164_p2  ;;  %s189_s10 = sshll.u32 %s1211_s2, 4  ;;  %s190_s10 = int_to_ptr.hbm [resolvable:$true] %s189_s10 }
   0xc   : > { %s984_s11 = smov [#allocation10]   ;;  %s985_s13 = smov 128  }
   0xd   : > { %p682_p4 = pneg %p1054_p3  ;;  %s205_s12 = sshll.u32 %s984_s11, 4  ;;  %s206_s12 = int_to_ptr.vmem [resolvable:$true] %s205_s12 }
   0xe   : > { %s986_s14 = smov 8   ;;  %s218_s17 = sshll.u32 %s1213_s4, 4  ;;  %s219_s17 = int_to_ptr.hbm [resolvable:$true] %s218_s17 }
   0xf   : > { %p1066_p6 = pnand %p682_p4, %p44_p1  ;;  %s987_s22 = smov [#allocation9]  }
  0x10   : > { %s191_s23 = sshll.u32 %s987_s22, 4  ;;  %s1086_s29 = sadd.s32 1, %s981_s21   ;;  %s192_s23 = int_to_ptr.vmem [resolvable:$true] %s191_s23 }
  0x11   : > { %685 = dma.hbm_to_vmem [thread:$0]  (!%p1066_p6), %s176_s24, 512, %s178_s28, [#allocation8], %s985_s13, %s985_s13, %s986_s14  }
  0x12   : > { %691 = dma.hbm_to_vmem [thread:$0]  (!%p1066_p6), %s204_s6, 512, %s206_s12, [#allocation11], %s985_s13, %s985_s13, %s986_s14  }
  0x13   : > { %688 = dma.hbm_to_vmem [thread:$0]  (!%p1066_p6), %s190_s10, 512, %s192_s23, [#allocation8], %s985_s13, %s985_s13, %s986_s14  }
  0x14   : > { %s988_s24 = smov [#allocation12]   ;;  %s636_s28 = sadd.s32 4294967294, %s981_s21  }
  0x15   : > { %s220_s27 = sshll.u32 %s988_s24, 4  ;;  %s27_s30 = ssub.s32 %s981_s21, %s1086_s29  ;;  %s221_s27 = int_to_ptr.vmem [resolvable:$true] %s220_s27 }
  0x16   : > { %694 = dma.hbm_to_vmem [thread:$0]  (!%p1066_p6), %s219_s17, 128, %s221_s27, [#allocation11]  }
  0x17   : > { %s30_s6 = sadd.s32 1, %s977_s20  ;;  %p28_p7 = scmp.eq.s32.totalorder %s27_s30, 0 }
  0x18   : > { %p37_p8 = scmp.ne.s32.totalorder %s977_s20, %s973_s19  ;;  %p38_p9 = scmp.eq.s32.totalorder %s981_s21, 0 }
  0x19   : > { %p43_p10 = scmp.ne.s32.totalorder %s973_s19, %s969_s18  ;;  %p151_p13 = scmp.eq.s32.totalorder %s1049_s25, 1 }
  0x1a   : > { %s1097_s8 = scalar_select %p28_p7, %s977_s20, %s30_s6  }
  0x1b   : > { %p1099_p11 = por %p38_p9, %p37_p8  ;;  %p1105_p12 = por %p44_p1, %p43_p10 }
  0x1c   : > { %p157_p0 = scmp.eq.s32.totalorder %s636_s28, 1  ;;  %p707_p2 = scmp.lt.s32.totalorder %s981_s21, 2 }
  0x1d   : > { %s231_s10 = sand.u32 1, %s977_s20   ;;  %p1112_p4 = por %p151_p13, %p37_p8 }
  0x1e   : > { %p1116_p6 = por %p157_p0, %p43_p10  ;;  %s643_s13 = sshll.u32 %s231_s10, 3 }
  0x1f   : > { %s644_s14 = sshll.u32 %s981_s21, 3  ;;  %s235_s22 = scalar_lea.vmem [#allocation4], %s643_s13 }
  0x20   : > { %s239_s17 = scalar_lea.hbm %s1209_s0, %s644_s14  ;;  %s243_s23 = sshll.u32 %s235_s22, 4  ;;  %s244_s23 = int_to_ptr.vmem [resolvable:$true] %s243_s23 }
  0x21   : > { %s241_s24 = sshll.u32 %s239_s17, 4  ;;  %p1126_p7 = pnand %p707_p2, %p1099_p11  ;;  %s242_s24 = int_to_ptr.hbm [resolvable:$true] %s241_s24 }
  0x22   : > { %s232_s28 = scalar_lea.sflag [#allocation5], %s231_s10  ;;  %s877_s30 = sshra.s32 %s242_s24, 4  ;;  %s878_s30 = int_to_ptr.hbm [resolvable:$true] %s877_s30 }
  0x23   : > { %s879_s6 = scalar_lea.hbm %s878_s30, 8  ;;  %p881_p9 = pneg %p1126_p7 }
  0x24   : > { %p880_p8 = scmp.ne.s32.totalorder %s878_s30, %s879_s6  ;;  %s884_s15 = scalar_lea.hbm %s1209_s0, 16 }
  0x25   : > { %p885_p11 = scmp.lt.s32.totalorder %s878_s30, %s1209_s0  ;;  %p886_p0 = scmp.lt.s32.totalorder %s884_s15, %s879_s6 }
  0x26   : > { %p882_p10 = pnand %p881_p9, %p880_p8 }
  0x27   : > { %p887_p2 = por %p886_p0, %p885_p11 }
  0x28   : > { %p883_p13 = pneg %p882_p10 }
  0x2a   : > { %p888_p5 = pnand %p887_p2, %p883_p13 }
  0x2c   : > { %891 = shalt.err (!%p888_p5)
}
  0x2d   : > { %698 = dma.hbm_to_vmem [thread:$0]  (!%p1126_p7), %s242_s24, 128, %s244_s23, %s232_s28  }
  0x2e   : > { %252 = sbr.rel (%p1054_p3) target bundleno = 717 (0x2cd), region = 40  ;;  %s1143_s10 = sand.u32 (!%p1054_p3), 1, %s973_s19  }
  0x2f   : > { %s646_s17 = sshll.u32 (!%p1054_p3), %s1143_s10, 3  ;;  %s255_s22 = scalar_lea.sflag (!%p1054_p3), [#allocation5], %s1143_s10 }
  0x30   : > { %s258_s30 = scalar_lea.vmem (!%p1054_p3), [#allocation4], %s646_s17 }
  0x33   : > { %952 = dma.done.wait (%p1105_p12), %s255_s22, 128  }
  0x34   : > { %954 = vsyncadd (%p1105_p12), %s255_s22, 4294967168 }
  0x35   : > { %956 = dma.done.wait (%p44_p1), [#allocation8], 1024  }
  0x36   : > { %958 = vsyncadd (%p44_p1), [#allocation8], 4294966272 }
  0x37   : > { %960 = dma.done.wait (%p44_p1), [#allocation11], 640  }
  0x38   : > { %962 = vsyncadd (%p44_p1), [#allocation11], 4294966656  ;;  %v310_v0 = vld [vmem:[#allocation7 + $0x18] sm:$0xff]  ;;  %v309_v1 = vld [vmem:[#allocation7 + $0x10] sm:$0xff]  ;;  %vm311_vm0 = vcmask 261120   ;;  %vm337_vm1 = vcmask 64512  }
  0x39   : > { %327 = vmatpush.msra.mxu0 %v310_v0  ;;  %v308_v2 = vld [vmem:[#allocation7 + $0x8] sm:$0xff]  ;;  %v307_v3 = vld [vmem:[#allocation7] sm:$0xff]  ;;  %v306_v4 = vld [vmem:[%s258_s30] sm:$0xff]  ;;  %s989_s26 = smov 104   ;;  %s990_s7 = smov 120   ;;  %vm416_vm2 = vcmask 130112  }
  0x3a   : > { %s991_s23 = smov 112   ;;  %v360_v8 = vld [vmem:[#allocation9] sm:$0xff]  ;;  %v451_v11 = vld [vmem:[#allocation9 + $0x18] sm:$0xff]  ;;  %v387_v14 = vld [vmem:[#allocation9 + $0x8] sm:$0xff]  ;;  %s992_s24 = smov 8   ;;  %vm448_vm3 = vcmask 195712  }
  0x3b   : > { %328 = vmatpush.msra.mxu0 %v309_v1  ;;  %v419_v16 = vld [vmem:[#allocation9 + $0x10] sm:$0xff]  ;;  %s993_s27 = smov 16   ;;  %s994_s28 = smov 24   ;;  %v486_v22 = vld [vmem:[#allocation10 + $0x18] sm:$0xff]  ;;  %v484_v24 = vld [vmem:[#allocation10 + $0x8] sm:$0xff]  ;;  %vm480_vm4 = vcmask 261312  }
  0x3c   : > { %v485_v23 = vld [vmem:[#allocation10 + $0x10] sm:$0xff]  ;;  %v483_v25 = vld [vmem:[#allocation10] sm:$0xff]  ;;  %s659_s6 = sshll.u32 %s1049_s25, 3  ;;  %s305_s16 = scalar_lea.vmem [#allocation13], %s646_s17 }
  0x3d   : > { %329 = vmatpush.msra.mxu0 %v308_v2  ;;  %s523_s15 = scalar_lea.hbm %s1214_s5, %s659_s6  ;;  %v487_v30 = vld [vmem:[#allocation12] sm:$0xff]  ;;  %s525_s9 = sshll.u32 %s305_s16, 4  ;;  %s526_s9 = int_to_ptr.vmem [resolvable:$true] %s525_s9 }
  0x3e   : > { %s527_s22 = sshll.u32 %s523_s15, 4  ;;  %s513_s30 = scalar_lea.sflag [#allocation6], %s1143_s10  ;;  %s528_s22 = int_to_ptr.hbm [resolvable:$true] %s527_s22 }
  0x3f   : > { %330 = vmatpush.msra.mxu0 %v307_v3  ;;  %s927_s17 = scalar_lea.hbm %s1214_s5, 16 }
  0x40   : > { %652 = vmatmul.msk.f32.vlgmr.msra.gmra.mxu0 %vm311_vm0, %v306_v4 }
  0xbd   : > { %v332_v5 = vpop.f32.mrf.mxu0 }
  0xbe   : > { %335 = vst.msk [vmem:[#allocation3] sm:$0xff] %vm311_vm0, %v332_v5 }
  0xc5   : > { %v336_v6 = vld [vmem:[#allocation3] sm:$0xff] }
  0xc6   : > { %355 = vrot.lane.b32.xlu1 %v336_v6, %s989_s26  ;;  %341 = vrot.lane.b32.xlu0 %v336_v6, %s990_s7  ;;  %338 = vst.msk [vmem:[#allocation2] sm:$0xff] %vm337_vm1, %v336_v6  ;;  %s921_s26 = sshra.s32 %s528_s22, 4  ;;  %s922_s26 = int_to_ptr.hbm [resolvable:$true] %s921_s26 }
  0xc7   : > { %s923_s25 = scalar_lea.hbm %s922_s26, 8  ;;  %p928_p12 = scmp.lt.s32.totalorder %s922_s26, %s1214_s5 }
  0xc8   : > { %p924_p1 = scmp.ne.s32.totalorder %s922_s26, %s923_s25  ;;  %p929_p7 = scmp.lt.s32.totalorder %s927_s17, %s923_s25 }
  0xca   : > { %p925_p3 = pnand %p924_p1, %p1112_p4  ;;  %p930_p8 = por %p929_p7, %p928_p12 }
  0xcc   : > { %p926_p5 = pneg %p925_p3 }
  0xcd   : > { %v361_v7 = vld [vmem:[#allocation2] sm:$0xff] }
  0xce   : > { %348 = vrot.lane.b32.xlu0 %v336_v6, %s991_s23  ;;  %380 = vmatpush.msra.mxu1 %v361_v7  ;;  %p931_p9 = pnand %p930_p8, %p926_p5 }
  0xcf   : > { %653 = vmatmul.msk.f32.vlgmr.msra.gmra.mxu1 %vm337_vm1, %v360_v8 }
 0x138   : > { %v356_v9 = vpop.permute.xlu1 %355  ;;  %v342_v10 = vpop.permute.xlu0 %341 }
 0x139   : > { %359 = vst.msk [vmem:[#allocation2 + $0x18] sm:$0xff] %vm337_vm1, %v356_v9 }
 0x13a   : > { %345 = vst.msk [vmem:[#allocation2 + $0x8] sm:$0xff] %vm337_vm1, %v342_v10 }
 0x140   : > { %v349_v12 = vpop.permute.xlu0 %348  ;;  %v452_v13 = vld [vmem:[#allocation2 + $0x18] sm:$0xff] }
 0x141   : > { %352 = vst.msk [vmem:[#allocation2 + $0x10] sm:$0xff] %vm337_vm1, %v349_v12  ;;  %v388_v15 = vld [vmem:[#allocation2 + $0x8] sm:$0xff]  ;;  %471 = vmatpush.msrb.mxu1 %v452_v13 }
 0x142   : > { %407 = vmatpush.msra.mxu2 %v388_v15  ;;  %656 = vmatmul.msk.f32.vlgmr.msrb.gmra.mxu1 %vm337_vm1, %v451_v11 }
 0x143   : > { %654 = vmatmul.msk.f32.vlgmr.msra.gmra.mxu2 %vm337_vm1, %v387_v14 }
 0x144   : > { %503 = vmatpush.msrb.mxu2 %v486_v22 }
 0x146   : > { %504 = vmatpush.msrb.mxu2 %v485_v23 }
 0x148   : > { %v420_v17 = vld [vmem:[#allocation2 + $0x10] sm:$0xff]  ;;  %505 = vmatpush.msrb.mxu2 %v484_v24 }
 0x149   : > { %439 = vmatpush.msra.mxu3 %v420_v17 }
 0x14a   : > { %655 = vmatmul.msk.f32.vlgmr.msra.gmra.mxu3 %vm337_vm1, %v419_v16  ;;  %506 = vmatpush.msrb.mxu2 %v483_v25 }
 0x14c   : > { %v382_v18 = vpop.f32.mrf.mxu1 }
 0x14d   : > { %385 = vst.msk [vmem:[#allocation3] sm:$0xff] %vm337_vm1, %v382_v18 }
 0x1bf   : > { %v473_v21 = vpop.f32.mrf.mxu1 }
 0x1c6   : > { %v409_v19 = vpop.f32.mrf.mxu2 }
 0x1c7   : > { %413 = vrot.lane.b32.xlu1 %v409_v19, %s992_s24 }
 0x1cd   : > { %v441_v20 = vpop.f32.mrf.mxu3 }
 0x1ce   : > { %445 = vrot.lane.b32.xlu2 %v441_v20, %s993_s27 }
 0x1d6   : > { %477 = vrot.lane.b32.xlu2 %v473_v21, %s994_s28 }
 0x228   : > { %v446_v26 = vpop.permute.xlu2 %445 }
 0x230   : > { %v478_v28 = vpop.permute.xlu2 %477 }
 0x239   : > { %v414_v27 = vpop.permute.xlu1 %413 }
 0x23a   : > { %417 = vst.msk [vmem:[#allocation3] sm:$0xff] %vm416_vm2, %v414_v27 }
 0x23b   : > { %449 = vst.msk [vmem:[#allocation3] sm:$0xff] %vm448_vm3, %v446_v26 }
 0x23c   : > { %481 = vst.msk [vmem:[#allocation3] sm:$0xff] %vm480_vm4, %v478_v28 }
 0x243   : > { %v482_v29 = vld [vmem:[#allocation3] sm:$0xff] }
 0x244   : > { %657 = vmatmul.msk.f32.vlgmr.msrb.gmra.mxu2 %vm311_vm0, %v482_v29 }
 0x2c7   : > { %v508_v31 = vpop.f32.mrf.mxu2 }
 0x2c8   : > { %v509_v32 = vadd.f32 %v508_v31, %v487_v30 }
 0x2ca   : > { %511 = vst.msk [vmem:[%s305_s16] sm:$0xff] %vm311_vm0, %v509_v32 }
 0x2cb   : > { %934 = shalt.err (!%p931_p9)
}
 0x2cc   : > { %680 = dma.vmem_to_hbm [thread:$0]  (%p1112_p4), %s526_s9, 128, %s528_s22, %s513_s30  }
 0x2cd PF: > { %s539_s10 = sand.u32 1, %s969_s18   ;;  %p1222_p10 = scmp.ge.s32.totalorder %s981_s21, 2 }
 0x2ce   : > { %s540_s28 = scalar_lea.sflag [#allocation6], %s539_s10 }
 0x2cf   : > { %p700_p13 = pnand %p1222_p10, %p1116_p6 }
 0x2d1   : > { %p701_p11 = pneg %p700_p13 }
 0x2d3   : > { %964 = dma.done.wait (%p701_p11), %s540_s28, 128  }
 0x2d4   : > { %966 = vsyncadd (%p701_p11), %s540_s28, 4294967168  ;;  %p20_p0 = scmp.ge.s32.totalorder %s1086_s29, 4   ;;  %s1223_s18 = smov %s973_s19 }
 0x2d5   : > { %s1224_s19 = smov %s977_s20  ;;  %s1225_s20 = smov %s1097_s8 }
 0x2d6   : > { %s1226_s21 = smov %s1086_s29  ;;  %22 = sbr.rel (!%p20_p0) target bundleno = 7 (0x7), region = 107 }
 0x2db   :  { %546 = vsyncpa [#allocation5], 1 }
 0x2dc   :  { %548 = vsyncpa [#allocation5 + $0x1], 1 }
 0x2dd   :  { %549 = vsyncpa [#allocation8], 1 }
 0x2de   :  { %550 = vsyncpa [#allocation11], 1 }
 0x2df   :  { %551 = vsyncpa [#allocation6], 1 }
 0x2e0   :  { %553 = vsyncpa [#allocation6 + $0x1], 1 }

// kernel: tpu_custom_call.1
= control target key start
LH: loop header
LB: loop body
LE: loop exit
PB: predicated region body
PF: predicated region fallthrough
CT: control target
= control target key end

     0   :  { %10 = vsyncpa [#allocation5], 0  ;;  %s1209_s0 = inlined_call_operand.hbm [shape: f32[16,32], index: 0, kind: input, shape index: {}]   ;;  %s1210_s1 = inlined_call_operand.hbm [shape: f32[32,32], index: 1, kind: input, shape index: {}]   ;;  %s1211_s2 = inlined_call_operand.hbm [shape: f32[4,8,8], index: 2, kind: input, shape index: {}]   ;;  %s1212_s3 = inlined_call_operand.hbm [shape: f32[32,32], index: 3, kind: input, shape index: {}]   ;;  %s1213_s4 = inlined_call_operand.hbm [shape: f32[8,32], index: 4, kind: input, shape index: {}]   ;;  %s1214_s5 = inlined_call_operand.hbm [shape: f32[16,32], index: 5, kind: output, shape index: {}]  }
   0x1   :  { %12 = vsyncpa [#allocation5 + $0x1], 0 }
   0x2   :  { %13 = vsyncpa [#allocation8], 0 }
   0x3   :  { %14 = vsyncpa [#allocation11], 0 }
   0x4   :  { %15 = vsyncpa [#allocation6], 0 }
   0x5   :  { %17 = vsyncpa [#allocation6 + $0x1], 0  ;;  %s1025_s18 = smov 0   ;;  %s1027_s19 = smov 0  }
   0x6   :  { %s1029_s20 = smov 0   ;;  %s1031_s21 = smov 0  }
   0x7 LB: > { %s175_s24 = sshll.u32 %s1210_s1, 4  ;;  %s1049_s25 = sadd.s32 4294967295, %s981_s21   ;;  %s981_s21 = sphi %s1031_s21, %s1226_s21   ;;  %s977_s20 = sphi %s1029_s20, %s1225_s20   ;;  %s973_s19 = sphi %s1027_s19, %s1224_s19   ;;  %s969_s18 = sphi %s1025_s18, %s1223_s18   ;;  %s176_s24 = int_to_ptr.hbm [resolvable:$true] %s175_s24 }
   0x8   : > { %p637_p0 = scmp.ge.s32.totalorder %s981_s21, 1  ;;  %p44_p1 = scmp.eq.s32.totalorder %s1049_s25, 0 }
   0x9   : > { %p164_p2 = scmp.lt.s32.totalorder %s981_s21, 3  ;;  %s983_s27 = smov [#allocation7]  }
   0xa   : > { %s177_s28 = sshll.u32 %s983_s27, 4  ;;  %s203_s6 = sshll.u32 %s1212_s3, 4  ;;  %s178_s28 = int_to_ptr.vmem [resolvable:$true] %s177_s28  ;;  %s204_s6 = int_to_ptr.hbm [resolvable:$true] %s203_s6 }
   0xb   : > { %p1054_p3 = pnand %p637_p0, %p164_p2  ;;  %s189_s10 = sshll.u32 %s1211_s2, 4  ;;  %s190_s10 = int_to_ptr.hbm [resolvable:$true] %s189_s10 }
   0xc   : > { %s984_s11 = smov [#allocation10]   ;;  %s985_s13 = smov 128  }
   0xd   : > { %p682_p4 = pneg %p1054_p3  ;;  %s205_s12 = sshll.u32 %s984_s11, 4  ;;  %s206_s12 = int_to_ptr.vmem [resolvable:$true] %s205_s12 }
   0xe   : > { %s986_s14 = smov 8   ;;  %s218_s17 = sshll.u32 %s1213_s4, 4  ;;  %s219_s17 = int_to_ptr.hbm [resolvable:$true] %s218_s17 }
   0xf   : > { %p1066_p6 = pnand %p682_p4, %p44_p1  ;;  %s987_s22 = smov [#allocation9]  }
  0x10   : > { %s191_s23 = sshll.u32 %s987_s22, 4  ;;  %s1086_s29 = sadd.s32 1, %s981_s21   ;;  %s192_s23 = int_to_ptr.vmem [resolvable:$true] %s191_s23 }
  0x11   : > { %685 = dma.hbm_to_vmem [thread:$0]  (!%p1066_p6), %s176_s24, 512, %s178_s28, [#allocation8], %s985_s13, %s985_s13, %s986_s14  }
  0x12   : > { %691 = dma.hbm_to_vmem [thread:$0]  (!%p1066_p6), %s204_s6, 512, %s206_s12, [#allocation11], %s985_s13, %s985_s13, %s986_s14  }
  0x13   : > { %688 = dma.hbm_to_vmem [thread:$0]  (!%p1066_p6), %s190_s10, 512, %s192_s23, [#allocation8], %s985_s13, %s985_s13, %s986_s14  }
  0x14   : > { %s988_s24 = smov [#allocation12]   ;;  %s636_s28 = sadd.s32 4294967294, %s981_s21  }
  0x15   : > { %s220_s27 = sshll.u32 %s988_s24, 4  ;;  %s27_s30 = ssub.s32 %s981_s21, %s1086_s29  ;;  %s221_s27 = int_to_ptr.vmem [resolvable:$true] %s220_s27 }
  0x16   : > { %694 = dma.hbm_to_vmem [thread:$0]  (!%p1066_p6), %s219_s17, 128, %s221_s27, [#allocation11]  }
  0x17   : > { %s30_s6 = sadd.s32 1, %s977_s20  ;;  %p28_p7 = scmp.eq.s32.totalorder %s27_s30, 0 }
  0x18   : > { %p37_p8 = scmp.ne.s32.totalorder %s977_s20, %s973_s19  ;;  %p38_p9 = scmp.eq.s32.totalorder %s981_s21, 0 }
  0x19   : > { %p43_p10 = scmp.ne.s32.totalorder %s973_s19, %s969_s18  ;;  %p151_p13 = scmp.eq.s32.totalorder %s1049_s25, 1 }
  0x1a   : > { %s1097_s8 = scalar_select %p28_p7, %s977_s20, %s30_s6  }
  0x1b   : > { %p1099_p11 = por %p38_p9, %p37_p8  ;;  %p1105_p12 = por %p44_p1, %p43_p10 }
  0x1c   : > { %p157_p0 = scmp.eq.s32.totalorder %s636_s28, 1  ;;  %p707_p2 = scmp.lt.s32.totalorder %s981_s21, 2 }
  0x1d   : > { %s231_s10 = sand.u32 1, %s977_s20   ;;  %p1112_p4 = por %p151_p13, %p37_p8 }
  0x1e   : > { %p1116_p6 = por %p157_p0, %p43_p10  ;;  %s643_s13 = sshll.u32 %s231_s10, 3 }
  0x1f   : > { %s644_s14 = sshll.u32 %s981_s21, 3  ;;  %s235_s22 = scalar_lea.vmem [#allocation4], %s643_s13 }
  0x20   : > { %s239_s17 = scalar_lea.hbm %s1209_s0, %s644_s14  ;;  %s243_s23 = sshll.u32 %s235_s22, 4  ;;  %s244_s23 = int_to_ptr.vmem [resolvable:$true] %s243_s23 }
  0x21   : > { %s241_s24 = sshll.u32 %s239_s17, 4  ;;  %p1126_p7 = pnand %p707_p2, %p1099_p11  ;;  %s242_s24 = int_to_ptr.hbm [resolvable:$true] %s241_s24 }
  0x22   : > { %s232_s28 = scalar_lea.sflag [#allocation5], %s231_s10  ;;  %s877_s30 = sshra.s32 %s242_s24, 4  ;;  %s878_s30 = int_to_ptr.hbm [resolvable:$true] %s877_s30 }
  0x23   : > { %s879_s6 = scalar_lea.hbm %s878_s30, 8  ;;  %p881_p9 = pneg %p1126_p7 }
  0x24   : > { %p880_p8 = scmp.ne.s32.totalorder %s878_s30, %s879_s6  ;;  %s884_s15 = scalar_lea.hbm %s1209_s0, 16 }
  0x25   : > { %p885_p11 = scmp.lt.s32.totalorder %s878_s30, %s1209_s0  ;;  %p886_p0 = scmp.lt.s32.totalorder %s884_s15, %s879_s6 }
  0x26   : > { %p882_p10 = pnand %p881_p9, %p880_p8 }
  0x27   : > { %p887_p2 = por %p886_p0, %p885_p11 }
  0x28   : > { %p883_p13 = pneg %p882_p10 }
  0x2a   : > { %p888_p5 = pnand %p887_p2, %p883_p13 }
  0x2c   : > { %891 = shalt.err (!%p888_p5)
}
  0x2d   : > { %698 = dma.hbm_to_vmem [thread:$0]  (!%p1126_p7), %s242_s24, 128, %s244_s23, %s232_s28  }
  0x2e   : > { %252 = sbr.rel (%p1054_p3) target bundleno = 717 (0x2cd), region = 40  ;;  %s1143_s10 = sand.u32 (!%p1054_p3), 1, %s973_s19  }
  0x2f   : > { %s646_s17 = sshll.u32 (!%p1054_p3), %s1143_s10, 3  ;;  %s255_s22 = scalar_lea.sflag (!%p1054_p3), [#allocation5], %s1143_s10 }
  0x30   : > { %s258_s30 = scalar_lea.vmem (!%p1054_p3), [#allocation4], %s646_s17 }
  0x33   : > { %952 = dma.done.wait (%p1105_p12), %s255_s22, 128  }
  0x34   : > { %954 = vsyncadd (%p1105_p12), %s255_s22, 4294967168 }
  0x35   : > { %956 = dma.done.wait (%p44_p1), [#allocation8], 1024  }
  0x36   : > { %958 = vsyncadd (%p44_p1), [#allocation8], 4294966272 }
  0x37   : > { %960 = dma.done.wait (%p44_p1), [#allocation11], 640  }
  0x38   : > { %962 = vsyncadd (%p44_p1), [#allocation11], 4294966656  ;;  %v310_v0 = vld [vmem:[#allocation7 + $0x18] sm:$0xff]  ;;  %v309_v1 = vld [vmem:[#allocation7 + $0x10] sm:$0xff]  ;;  %vm311_vm0 = vcmask 261120   ;;  %vm337_vm1 = vcmask 64512  }
  0x39   : > { %327 = vmatpush.msra.mxu0 %v310_v0  ;;  %v308_v2 = vld [vmem:[#allocation7 + $0x8] sm:$0xff]  ;;  %v307_v3 = vld [vmem:[#allocation7] sm:$0xff]  ;;  %v306_v4 = vld [vmem:[%s258_s30] sm:$0xff]  ;;  %s989_s26 = smov 104   ;;  %s990_s7 = smov 120   ;;  %vm416_vm2 = vcmask 130112  }
  0x3a   : > { %s991_s23 = smov 112   ;;  %v360_v8 = vld [vmem:[#allocation9] sm:$0xff]  ;;  %v451_v11 = vld [vmem:[#allocation9 + $0x18] sm:$0xff]  ;;  %v387_v14 = vld [vmem:[#allocation9 + $0x8] sm:$0xff]  ;;  %s992_s24 = smov 8   ;;  %vm448_vm3 = vcmask 195712  }
  0x3b   : > { %328 = vmatpush.msra.mxu0 %v309_v1  ;;  %v419_v16 = vld [vmem:[#allocation9 + $0x10] sm:$0xff]  ;;  %s993_s27 = smov 16   ;;  %s994_s28 = smov 24   ;;  %v486_v22 = vld [vmem:[#allocation10 + $0x18] sm:$0xff]  ;;  %v484_v24 = vld [vmem:[#allocation10 + $0x8] sm:$0xff]  ;;  %vm480_vm4 = vcmask 261312  }
  0x3c   : > { %v485_v23 = vld [vmem:[#allocation10 + $0x10] sm:$0xff]  ;;  %v483_v25 = vld [vmem:[#allocation10] sm:$0xff]  ;;  %s659_s6 = sshll.u32 %s1049_s25, 3  ;;  %s305_s16 = scalar_lea.vmem [#allocation13], %s646_s17 }
  0x3d   : > { %329 = vmatpush.msra.mxu0 %v308_v2  ;;  %s523_s15 = scalar_lea.hbm %s1214_s5, %s659_s6  ;;  %v487_v30 = vld [vmem:[#allocation12] sm:$0xff]  ;;  %s525_s9 = sshll.u32 %s305_s16, 4  ;;  %s526_s9 = int_to_ptr.vmem [resolvable:$true] %s525_s9 }
  0x3e   : > { %s527_s22 = sshll.u32 %s523_s15, 4  ;;  %s513_s30 = scalar_lea.sflag [#allocation6], %s1143_s10  ;;  %s528_s22 = int_to_ptr.hbm [resolvable:$true] %s527_s22 }
  0x3f   : > { %330 = vmatpush.msra.mxu0 %v307_v3  ;;  %s927_s17 = scalar_lea.hbm %s1214_s5, 16 }
  0x40   : > { %652 = vmatmul.msk.f32.vlgmr.msra.gmra.mxu0 %vm311_vm0, %v306_v4 }
  0xbd   : > { %v332_v5 = vpop.f32.mrf.mxu0 }
  0xbe   : > { %335 = vst.msk [vmem:[#allocation3] sm:$0xff] %vm311_vm0, %v332_v5 }
  0xc5   : > { %v336_v6 = vld [vmem:[#allocation3] sm:$0xff] }
  0xc6   : > { %355 = vrot.lane.b32.xlu1 %v336_v6, %s989_s26  ;;  %341 = vrot.lane.b32.xlu0 %v336_v6, %s990_s7  ;;  %338 = vst.msk [vmem:[#allocation2] sm:$0xff] %vm337_vm1, %v336_v6  ;;  %s921_s26 = sshra.s32 %s528_s22, 4  ;;  %s922_s26 = int_to_ptr.hbm [resolvable:$true] %s921_s26 }
  0xc7   : > { %s923_s25 = scalar_lea.hbm %s922_s26, 8  ;;  %p928_p12 = scmp.lt.s32.totalorder %s922_s26, %s1214_s5 }
  0xc8   : > { %p924_p1 = scmp.ne.s32.totalorder %s922_s26, %s923_s25  ;;  %p929_p7 = scmp.lt.s32.totalorder %s927_s17, %s923_s25 }
  0xca   : > { %p925_p3 = pnand %p924_p1, %p1112_p4  ;;  %p930_p8 = por %p929_p7, %p928_p12 }
  0xcc   : > { %p926_p5 = pneg %p925_p3 }
  0xcd   : > { %v361_v7 = vld [vmem:[#allocation2] sm:$0xff] }
  0xce   : > { %348 = vrot.lane.b32.xlu0 %v336_v6, %s991_s23  ;;  %380 = vmatpush.msra.mxu1 %v361_v7  ;;  %p931_p9 = pnand %p930_p8, %p926_p5 }
  0xcf   : > { %653 = vmatmul.msk.f32.vlgmr.msra.gmra.mxu1 %vm337_vm1, %v360_v8 }
 0x138   : > { %v356_v9 = vpop.permute.xlu1 %355  ;;  %v342_v10 = vpop.permute.xlu0 %341 }
 0x139   : > { %359 = vst.msk [vmem:[#allocation2 + $0x18] sm:$0xff] %vm337_vm1, %v356_v9 }
 0x13a   : > { %345 = vst.msk [vmem:[#allocation2 + $0x8] sm:$0xff] %vm337_vm1, %v342_v10 }
 0x140   : > { %v349_v12 = vpop.permute.xlu0 %348  ;;  %v452_v13 = vld [vmem:[#allocation2 + $0x18] sm:$0xff] }
 0x141   : > { %352 = vst.msk [vmem:[#allocation2 + $0x10] sm:$0xff] %vm337_vm1, %v349_v12  ;;  %v388_v15 = vld [vmem:[#allocation2 + $0x8] sm:$0xff]  ;;  %471 = vmatpush.msrb.mxu1 %v452_v13 }
 0x142   : > { %407 = vmatpush.msra.mxu2 %v388_v15  ;;  %656 = vmatmul.msk.f32.vlgmr.msrb.gmra.mxu1 %vm337_vm1, %v451_v11 }
 0x143   : > { %654 = vmatmul.msk.f32.vlgmr.msra.gmra.mxu2 %vm337_vm1, %v387_v14 }
 0x144   : > { %503 = vmatpush.msrb.mxu2 %v486_v22 }
 0x146   : > { %504 = vmatpush.msrb.mxu2 %v485_v23 }
 0x148   : > { %v420_v17 = vld [vmem:[#allocation2 + $0x10] sm:$0xff]  ;;  %505 = vmatpush.msrb.mxu2 %v484_v24 }
 0x149   : > { %439 = vmatpush.msra.mxu3 %v420_v17 }
 0x14a   : > { %655 = vmatmul.msk.f32.vlgmr.msra.gmra.mxu3 %vm337_vm1, %v419_v16  ;;  %506 = vmatpush.msrb.mxu2 %v483_v25 }
 0x14c   : > { %v382_v18 = vpop.f32.mrf.mxu1 }
 0x14d   : > { %385 = vst.msk [vmem:[#allocation3] sm:$0xff] %vm337_vm1, %v382_v18 }
 0x1bf   : > { %v473_v21 = vpop.f32.mrf.mxu1 }
 0x1c6   : > { %v409_v19 = vpop.f32.mrf.mxu2 }
 0x1c7   : > { %413 = vrot.lane.b32.xlu1 %v409_v19, %s992_s24 }
 0x1cd   : > { %v441_v20 = vpop.f32.mrf.mxu3 }
 0x1ce   : > { %445 = vrot.lane.b32.xlu2 %v441_v20, %s993_s27 }
 0x1d6   : > { %477 = vrot.lane.b32.xlu2 %v473_v21, %s994_s28 }
 0x228   : > { %v446_v26 = vpop.permute.xlu2 %445 }
 0x230   : > { %v478_v28 = vpop.permute.xlu2 %477 }
 0x239   : > { %v414_v27 = vpop.permute.xlu1 %413 }
 0x23a   : > { %417 = vst.msk [vmem:[#allocation3] sm:$0xff] %vm416_vm2, %v414_v27 }
 0x23b   : > { %449 = vst.msk [vmem:[#allocation3] sm:$0xff] %vm448_vm3, %v446_v26 }
 0x23c   : > { %481 = vst.msk [vmem:[#allocation3] sm:$0xff] %vm480_vm4, %v478_v28 }
 0x243   : > { %v482_v29 = vld [vmem:[#allocation3] sm:$0xff] }
 0x244   : > { %657 = vmatmul.msk.f32.vlgmr.msrb.gmra.mxu2 %vm311_vm0, %v482_v29 }
 0x2c7   : > { %v508_v31 = vpop.f32.mrf.mxu2 }
 0x2c8   : > { %v509_v32 = vadd.f32 %v508_v31, %v487_v30 }
 0x2ca   : > { %511 = vst.msk [vmem:[%s305_s16] sm:$0xff] %vm311_vm0, %v509_v32 }
 0x2cb   : > { %934 = shalt.err (!%p931_p9)
}
 0x2cc   : > { %680 = dma.vmem_to_hbm [thread:$0]  (%p1112_p4), %s526_s9, 128, %s528_s22, %s513_s30  }
 0x2cd PF: > { %s539_s10 = sand.u32 1, %s969_s18   ;;  %p1222_p10 = scmp.ge.s32.totalorder %s981_s21, 2 }
 0x2ce   : > { %s540_s28 = scalar_lea.sflag [#allocation6], %s539_s10 }
 0x2cf   : > { %p700_p13 = pnand %p1222_p10, %p1116_p6 }
 0x2d1   : > { %p701_p11 = pneg %p700_p13 }
 0x2d3   : > { %964 = dma.done.wait (%p701_p11), %s540_s28, 128  }
 0x2d4   : > { %966 = vsyncadd (%p701_p11), %s540_s28, 4294967168  ;;  %p20_p0 = scmp.ge.s32.totalorder %s1086_s29, 4   ;;  %s1223_s18 = smov %s973_s19 }
 0x2d5   : > { %s1224_s19 = smov %s977_s20  ;;  %s1225_s20 = smov %s1097_s8 }
 0x2d6   : > { %s1226_s21 = smov %s1086_s29  ;;  %22 = sbr.rel (!%p20_p0) target bundleno = 7 (0x7), region = 107 }
 0x2db   :  { %546 = vsyncpa [#allocation5], 1 }
 0x2dc   :  { %548 = vsyncpa [#allocation5 + $0x1], 1 }
 0x2dd   :  { %549 = vsyncpa [#allocation8], 1 }
 0x2de   :  { %550 = vsyncpa [#allocation11], 1 }
 0x2df   :  { %551 = vsyncpa [#allocation6], 1 }
 0x2e0   :  { %553 = vsyncpa [#allocation6 + $0x1], 1 }

</bundles_post_ra>
